<compile_context>
chip_gen: v7x
topology: tpu7x:2x2x1
jax: 0.10.0
libtpu: 0.0.40
codegen_flags: <defaults>
</compile_context>

<pallas_src>
import functools

import jax
import jax.numpy as jnp
import numpy as np
from jax.experimental import pallas as pl
from jax.experimental.pallas import tpu as pltpu


def _round_up(x, m):
    return (x + m - 1) // m * m


def _supcon_tile_kernel(feat_r_ref, feat_c_ref, lab_r_ref, lab_c_ref,
                        out_ref, m_ref, l_ref, spa_ref, sp_ref,
                        *, n_valid, n_padded):
    """One (row-tile, col-tile) step of the SupCon forward.

    feat_r_ref : (TM, Dp) bf16   anchor rows, already scaled by 1/sqrt(temp)
    feat_c_ref : (TN, Dp) bf16   contrast cols, same scaling
    lab_r_ref  : (TM, 1)  int32  row labels (sentinel on padded rows)
    lab_c_ref  : (1, TN)  int32  col labels (sentinel on padded cols)
    out_ref    : (TM, 1)  f32    per-row mean_log_prob_pos (written at last j)
    m/l/spa/sp : (TM, 1)  f32    online-logsumexp max / exp-sum, sum(pos*adc), sum(pos)
    """
    i = pl.program_id(0)
    j = pl.program_id(1)
    nj = pl.num_programs(1)

    @pl.when(j == 0)
    def _init():
        m_ref[...] = jnp.full_like(m_ref, -jnp.inf)
        l_ref[...] = jnp.zeros_like(l_ref)
        spa_ref[...] = jnp.zeros_like(spa_ref)
        sp_ref[...] = jnp.zeros_like(sp_ref)

    a = feat_r_ref[...]                      # (TM, Dp) bf16
    b = feat_c_ref[...]                      # (TN, Dp) bf16
    tm, tn = a.shape[0], b.shape[0]

    # anchor_dot_contrast tile = a @ b.T, f32 accumulation on the MXU.
    # (temperature already folded into both operands in the wrapper)
    adc = jax.lax.dot_general(
        a, b, dimension_numbers=(((1,), (1,)), ((), ())),
        preferred_element_type=jnp.float32)

    if n_padded != n_valid:
        # Exclude zero-padded columns from max / exp-sum. Finite bias (not -inf)
        # so pos * adc stays finite below.
        col_ids = jax.lax.broadcasted_iota(jnp.int32, (1, tn), 1) + j * tn
        adc = jnp.where(col_ids < n_valid, adc, jnp.float32(-1e30))

    # Positive-pair mask built in-kernel from label equality (broadcast compare).
    pos = (lab_r_ref[...] == lab_c_ref[...]).astype(jnp.float32)     # (TM, TN)

    # Online logsumexp over the contrast columns.
    m_old = m_ref[...]
    m_new = jnp.maximum(m_old, jnp.max(adc, axis=1, keepdims=True))  # (TM, 1)
    rescale = jnp.exp(m_old - m_new)
    p = jnp.exp(adc - m_new)                                         # (TM, TN)

    l_ref[...] = l_ref[...] * rescale + jnp.sum(p, axis=1, keepdims=True)
    spa_ref[...] += jnp.sum(pos * adc, axis=1, keepdims=True)
    sp_ref[...] += jnp.sum(pos, axis=1, keepdims=True)
    m_ref[...] = m_new

    # Self-contrast exclusion: the diagonal only intersects tiles with i == j
    # (TM == TN), so the eye-mask work is gated to those tiles only.
    @pl.when(i == j)
    def _diag_correction():
        rid = jax.lax.broadcasted_iota(jnp.int32, (tm, tn), 0)
        cid = jax.lax.broadcasted_iota(jnp.int32, (tm, tn), 1)
        eye = rid == cid
        diag_adc = jnp.sum(jnp.where(eye, adc, 0.0), axis=1, keepdims=True)
        l_ref[...] -= jnp.exp(diag_adc - m_new)   # remove self from exp-sum
        spa_ref[...] -= diag_adc                  # self is always a label match
        sp_ref[...] -= 1.0

    @pl.when(j == nj - 1)
    def _finalize():
        sp = sp_ref[...]
        lse = m_ref[...] + jnp.log(l_ref[...])
        mlpp = spa_ref[...] * pl.reciprocal(sp, approx=True) - lse
        # Guard rows with zero positive pairs (0/0 -> NaN in the torch original);
        # they contribute 0 to the mean instead of poisoning it.
        out_ref[...] = jnp.where(sp > 0.5, mlpp, 0.0)


def supcon_loss(features, labels=None, *, temperature=0.1, base_temperature=0.1,
                mask=None, contrast_mode='all'):
    """JAX wrapper mirroring SupConLoss.forward (contrast_mode='all')."""
    if features.ndim < 3:
        raise ValueError('`features` needs to be [bsz, n_views, ...]')
    if features.ndim > 3:
        features = features.reshape(features.shape[0], features.shape[1], -1)
    if contrast_mode != 'all':
        # TODO(synk): contrast_mode='one' (anchor = first view only) not implemented.
        raise NotImplementedError('only contrast_mode="all" implemented')
    if labels is not None and mask is not None:
        raise ValueError('Cannot define both `labels` and `mask`')
    if mask is not None:
        # TODO(synk): arbitrary/asymmetric bsz x bsz mask input not implemented
        # (only label-equality / SimCLR masks are regenerated in-kernel).
        raise NotImplementedError('explicit `mask` not implemented')

    bsz, n_views, d = features.shape
    if labels is None:
        labels = jnp.arange(bsz, dtype=jnp.int32)   # label-equality == eye(bsz) (SimCLR)
    else:
        labels = jnp.asarray(labels).reshape(-1).astype(jnp.int32)
        if labels.shape[0] != bsz:
            raise ValueError('Num of labels does not match num of features')

    n = bsz * n_views

    # MXU/vreg aligned tile sizes (TM == TN required by the diagonal-tile logic).
    if n % 256 == 0 or n >= 1024:
        tile = 256
    elif n >= 128:
        tile = 128
    else:
        tile = _round_up(n, 8)                      # single tile; block == full dims
    n_pad = _round_up(n, tile)
    d_pad = _round_up(d, 128)

    # contrast_feature = cat(unbind(features, dim=1), dim=0) -> view-major [N, D].
    feat = jnp.transpose(features, (1, 0, 2)).reshape(n, d).astype(jnp.float32)
    # Fold temperature into the features: (f/sqrt(t)) @ (f/sqrt(t)).T = f@f.T / t.
    feat = feat / jnp.sqrt(jnp.float32(temperature))
    feat = jnp.pad(feat, ((0, n_pad - n), (0, d_pad - d)))
    feat = feat.astype(jnp.bfloat16)

    # Per-row labels (view-major), padded with a sentinel that never matches.
    lab = jnp.tile(labels, n_views)                 # label of row r == labels[r % bsz]
    if n_pad > n:
        sentinel = jnp.min(labels) - 1
        lab = jnp.concatenate(
            [lab, jnp.broadcast_to(sentinel, (n_pad - n,)).astype(jnp.int32)])
    lab_r = lab.reshape(n_pad, 1)
    lab_c = lab.reshape(1, n_pad)

    n_tiles = n_pad // tile
    kernel = functools.partial(_supcon_tile_kernel, n_valid=n, n_padded=n_pad)

    mlpp = pl.pallas_call(
        kernel,
        out_shape=jax.ShapeDtypeStruct((n_pad, 1), jnp.float32),
        grid_spec=pltpu.PrefetchScalarGridSpec(
            num_scalar_prefetch=0,
            grid=(n_tiles, n_tiles),
            in_specs=[
                pl.BlockSpec((tile, d_pad), lambda i, j: (i, 0)),   # anchor rows
                pl.BlockSpec((tile, d_pad), lambda i, j: (j, 0)),   # contrast cols
                pl.BlockSpec((tile, 1), lambda i, j: (i, 0)),       # row labels
                pl.BlockSpec((1, tile), lambda i, j: (0, j)),       # col labels
            ],
            out_specs=pl.BlockSpec((tile, 1), lambda i, j: (i, 0)),
            scratch_shapes=[pltpu.VMEM((tile, 1), jnp.float32)] * 4,
        ),
        compiler_params=pltpu.CompilerParams(
            dimension_semantics=("parallel", "arbitrary"),
            vmem_limit_bytes=48 * 1024 * 1024,
        ),
    )(feat, feat, lab_r, lab_c)

    # loss = -(temp/base_temp) * mean_log_prob_pos, averaged over all N anchors
    # (== loss.view(anchor_count, bsz).mean()). Padded rows are sliced away.
    # (mean_log_prob_neg is computed in the torch module but never used.)
    mean_log_prob_pos = mlpp[:n, 0]
    return -(temperature / base_temperature) * jnp.mean(mean_log_prob_pos)


def _supcon_loss_ref(features, labels, temperature=0.1, base_temperature=0.1):
    """Plain-JAX f32 reference replicating the torch forward (sanity check)."""
    bsz, n_views, d = features.shape
    labels = labels.reshape(-1, 1)
    base_mask = (labels == labels.T).astype(jnp.float32)
    feat = jnp.transpose(features, (1, 0, 2)).reshape(n_views * bsz, d)
    n = n_views * bsz
    adc = feat @ feat.T / temperature
    logits = adc - jnp.max(adc, axis=1, keepdims=True)
    logits_mask = 1.0 - jnp.eye(n, dtype=jnp.float32)
    m = jnp.tile(base_mask, (n_views, n_views)) * logits_mask
    exp_logits = jnp.exp(logits) * logits_mask
    log_prob = logits - jnp.log(jnp.sum(exp_logits, axis=1, keepdims=True))
    mean_log_prob_pos = jnp.sum(m * log_prob, axis=1) / jnp.sum(m, axis=1)
    loss = -(temperature / base_temperature) * mean_log_prob_pos
    return jnp.mean(loss)


if __name__ == "__main__":
    key = jax.random.PRNGKey(0)
    k_feat, k_lab = jax.random.split(key)

    bsz, n_views, d = 8, 2, 32
    features = jax.random.normal(k_feat, (bsz, n_views, d), dtype=jnp.float32)
    # L2-normalize (typical usage of SupCon features; forward works either way)
    features = features / jnp.linalg.norm(features, axis=-1, keepdims=True)
    labels = jax.random.randint(k_lab, (bsz,), 0, 4)

    loss = supcon_loss(features, labels, temperature=0.1, base_temperature=0.1)
    loss = jax.block_until_ready(loss)

    ref = _supcon_loss_ref(features, labels, temperature=0.1, base_temperature=0.1)
    # Tolerance loosened vs the f32 reference because the kernel uses bf16 MXU
    # inputs (f32 accumulation) and an approx reciprocal.
    np.testing.assert_allclose(np.asarray(loss), np.asarray(ref), rtol=5e-2, atol=5e-2)

    print("KERNEL_OK")
</pallas_src>

<mosaic_0001>
module attributes {stable_mosaic.version = 11 : i64} {
  func.func @_supcon_tile_kernel(%arg0: i32, %arg1: i32, %arg2: memref<16x128xbf16, #tpu.memory_space<vmem>>, %arg3: memref<16x128xbf16, #tpu.memory_space<vmem>>, %arg4: memref<16x1xi32, #tpu.memory_space<vmem>>, %arg5: memref<1x16xi32, #tpu.memory_space<vmem>>, %arg6: memref<16x1xf32, #tpu.memory_space<vmem>>, %arg7: memref<16x1xf32, #tpu.memory_space<vmem>>, %arg8: memref<16x1xf32, #tpu.memory_space<vmem>>, %arg9: memref<16x1xf32, #tpu.memory_space<vmem>>, %arg10: memref<16x1xf32, #tpu.memory_space<vmem>>) attributes {dimension_semantics = [#tpu.dimension_semantics<parallel>, #tpu.dimension_semantics<arbitrary>], iteration_bounds = array<i64: 1, 1>, scalar_prefetch = 0 : i64, scratch_operands = 4 : i64, tpu.core_type = #tpu.core_type<tc>, window_params = [{transform_indices = @transform_0, window_bounds = array<i64: 16, 128>}, {transform_indices = @transform_1, window_bounds = array<i64: 16, 128>}, {transform_indices = @transform_2, window_bounds = array<i64: 16, 1>}, {transform_indices = @transform_3, window_bounds = array<i64: 1, 16>}, {transform_indices = @transform_4, window_bounds = array<i64: 16, 1>}]} {
    %c0_i32 = arith.constant 0 : i32
    %0 = arith.cmpi eq, %arg1, %c0_i32 : i32
    %1 = arith.extui %0 : i1 to i32
    %c0_i32_0 = arith.constant 0 : i32
    %2 = arith.cmpi ne, %1, %c0_i32_0 : i32
    scf.if %2 {
      %cst_31 = arith.constant 0xFF800000 : f32
      %46 = vector.broadcast %cst_31 : f32 to vector<16x1xf32>
      %c0_32 = arith.constant 0 : index
      %c0_33 = arith.constant 0 : index
      %47 = vector.load %arg7[%c0_32, %c0_33] : memref<16x1xf32, #tpu.memory_space<vmem>>, vector<16x1xf32>
      tpu.vector_store %arg7[%c0_32, %c0_33], %46 {strides = array<i32>} : memref<16x1xf32, #tpu.memory_space<vmem>>, vector<16x1xf32>,
      %cst_34 = arith.constant 0.000000e+00 : f32
      %48 = vector.broadcast %cst_34 : f32 to vector<16x1xf32>
      %c0_35 = arith.constant 0 : index
      %c0_36 = arith.constant 0 : index
      %49 = vector.load %arg8[%c0_35, %c0_36] : memref<16x1xf32, #tpu.memory_space<vmem>>, vector<16x1xf32>
      tpu.vector_store %arg8[%c0_35, %c0_36], %48 {strides = array<i32>} : memref<16x1xf32, #tpu.memory_space<vmem>>, vector<16x1xf32>,
      %cst_37 = arith.constant 0.000000e+00 : f32
      %50 = vector.broadcast %cst_37 : f32 to vector<16x1xf32>
      %c0_38 = arith.constant 0 : index
      %c0_39 = arith.constant 0 : index
      %51 = vector.load %arg9[%c0_38, %c0_39] : memref<16x1xf32, #tpu.memory_space<vmem>>, vector<16x1xf32>
      tpu.vector_store %arg9[%c0_38, %c0_39], %50 {strides = array<i32>} : memref<16x1xf32, #tpu.memory_space<vmem>>, vector<16x1xf32>,
      %cst_40 = arith.constant 0.000000e+00 : f32
      %52 = vector.broadcast %cst_40 : f32 to vector<16x1xf32>
      %c0_41 = arith.constant 0 : index
      %c0_42 = arith.constant 0 : index
      %53 = vector.load %arg10[%c0_41, %c0_42] : memref<16x1xf32, #tpu.memory_space<vmem>>, vector<16x1xf32>
      tpu.vector_store %arg10[%c0_41, %c0_42], %52 {strides = array<i32>} : memref<16x1xf32, #tpu.memory_space<vmem>>, vector<16x1xf32>,
    } else {
    }
    %c0 = arith.constant 0 : index
    %c0_1 = arith.constant 0 : index
    %3 = vector.load %arg2[%c0, %c0_1] : memref<16x128xbf16, #tpu.memory_space<vmem>>, vector<16x128xbf16>
    %c0_2 = arith.constant 0 : index
    %c0_3 = arith.constant 0 : index
    %4 = vector.load %arg3[%c0_2, %c0_3] : memref<16x128xbf16, #tpu.memory_space<vmem>>, vector<16x128xbf16>
    %cst = arith.constant dense<0.000000e+00> : vector<16x16xf32>
    %5 = tpu.matmul %3, %4, %cst {dimension_numbers = #tpu.dot_dimension_numbers<[1], [1], [0], [0], [0, 0, 1, 0], [], []>} : vector<16x128xbf16>, vector<16x128xbf16>, vector<16x16xf32> -> vector<16x16xf32>
    %c0_4 = arith.constant 0 : index
    %c0_5 = arith.constant 0 : index
    %6 = vector.load %arg4[%c0_4, %c0_5] : memref<16x1xi32, #tpu.memory_space<vmem>>, vector<16x1xi32>
    %c0_6 = arith.constant 0 : index
    %c0_7 = arith.constant 0 : index
    %7 = vector.load %arg5[%c0_6, %c0_7] : memref<1x16xi32, #tpu.memory_space<vmem>>, vector<1x16xi32>
    %8 = vector.broadcast %6 : vector<16x1xi32> to vector<16x16xi32>
    %9 = vector.broadcast %7 : vector<1x16xi32> to vector<16x16xi32>
    %10 = arith.cmpi eq, %8, %9 : vector<16x16xi32>
    %11 = arith.extui %10 : vector<16x16xi1> to vector<16x16xi32>
    %12 = arith.sitofp %11 : vector<16x16xi32> to vector<16x16xf32>
    %c0_8 = arith.constant 0 : index
    %c0_9 = arith.constant 0 : index
    %13 = vector.load %arg7[%c0_8, %c0_9] : memref<16x1xf32, #tpu.memory_space<vmem>>, vector<16x1xf32>
    %cst_10 = arith.constant dense<0xFF800000> : vector<16xf32>
    %14 = vector.multi_reduction <maximumf>, %5, %cst_10 [1] : vector<16x16xf32> to vector<16xf32>
    %15 = vector.shape_cast %14 : vector<16xf32> to vector<16x1xf32>
    %16 = arith.maximumf %13, %15 : vector<16x1xf32>
    %17 = arith.subf %13, %16 : vector<16x1xf32>
    %18 = math.exp %17 : vector<16x1xf32>
    %19 = vector.broadcast %16 : vector<16x1xf32> to vector<16x16xf32>
    %20 = arith.subf %5, %19 : vector<16x16xf32>
    %21 = math.exp %20 : vector<16x16xf32>
    %c0_11 = arith.constant 0 : index
    %c0_12 = arith.constant 0 : index
    %22 = vector.load %arg8[%c0_11, %c0_12] : memref<16x1xf32, #tpu.memory_space<vmem>>, vector<16x1xf32>
    %23 = arith.mulf %22, %18 : vector<16x1xf32>
    %cst_13 = arith.constant dense<0.000000e+00> : vector<16xf32>
    %24 = vector.multi_reduction <add>, %21, %cst_13 [1] : vector<16x16xf32> to vector<16xf32>
    %25 = vector.shape_cast %24 : vector<16xf32> to vector<16x1xf32>
    %26 = arith.addf %23, %25 : vector<16x1xf32>
    %c0_14 = arith.constant 0 : index
    %c0_15 = arith.constant 0 : index
    %27 = vector.load %arg8[%c0_14, %c0_15] : memref<16x1xf32, #tpu.memory_space<vmem>>, vector<16x1xf32>
    tpu.vector_store %arg8[%c0_14, %c0_15], %26 {strides = array<i32>} : memref<16x1xf32, #tpu.memory_space<vmem>>, vector<16x1xf32>,
    %c0_16 = arith.constant 0 : index
    %c0_17 = arith.constant 0 : index
    %28 = vector.load %arg9[%c0_16, %c0_17] : memref<16x1xf32, #tpu.memory_space<vmem>>, vector<16x1xf32>
    %29 = arith.mulf %12, %5 : vector<16x16xf32>
    %cst_18 = arith.constant dense<0.000000e+00> : vector<16xf32>
    %30 = vector.multi_reduction <add>, %29, %cst_18 [1] : vector<16x16xf32> to vector<16xf32>
    %31 = vector.shape_cast %30 : vector<16xf32> to vector<16x1xf32>
    %32 = arith.addf %28, %31 : vector<16x1xf32>
    %c0_19 = arith.constant 0 : index
    %c0_20 = arith.constant 0 : index
    %33 = vector.load %arg9[%c0_19, %c0_20] : memref<16x1xf32, #tpu.memory_space<vmem>>, vector<16x1xf32>
    tpu.vector_store %arg9[%c0_19, %c0_20], %32 {strides = array<i32>} : memref<16x1xf32, #tpu.memory_space<vmem>>, vector<16x1xf32>,
    %c0_21 = arith.constant 0 : index
    %c0_22 = arith.constant 0 : index
    %34 = vector.load %arg10[%c0_21, %c0_22] : memref<16x1xf32, #tpu.memory_space<vmem>>, vector<16x1xf32>
    %cst_23 = arith.constant dense<0.000000e+00> : vector<16xf32>
    %35 = vector.multi_reduction <add>, %12, %cst_23 [1] : vector<16x16xf32> to vector<16xf32>
    %36 = vector.shape_cast %35 : vector<16xf32> to vector<16x1xf32>
    %37 = arith.addf %34, %36 : vector<16x1xf32>
    %c0_24 = arith.constant 0 : index
    %c0_25 = arith.constant 0 : index
    %38 = vector.load %arg10[%c0_24, %c0_25] : memref<16x1xf32, #tpu.memory_space<vmem>>, vector<16x1xf32>
    tpu.vector_store %arg10[%c0_24, %c0_25], %37 {strides = array<i32>} : memref<16x1xf32, #tpu.memory_space<vmem>>, vector<16x1xf32>,
    %c0_26 = arith.constant 0 : index
    %c0_27 = arith.constant 0 : index
    %39 = vector.load %arg7[%c0_26, %c0_27] : memref<16x1xf32, #tpu.memory_space<vmem>>, vector<16x1xf32>
    tpu.vector_store %arg7[%c0_26, %c0_27], %16 {strides = array<i32>} : memref<16x1xf32, #tpu.memory_space<vmem>>, vector<16x1xf32>,
    %40 = arith.cmpi eq, %arg0, %arg1 : i32
    %41 = arith.extui %40 : i1 to i32
    %c0_i32_28 = arith.constant 0 : i32
    %42 = arith.cmpi ne, %41, %c0_i32_28 : i32
    scf.if %42 {
      %46 = tpu.iota {dimensions = array<i32: 0>} : vector<16x16xi32>
      %47 = tpu.iota {dimensions = array<i32: 1>} : vector<16x16xi32>
      %48 = arith.cmpi eq, %46, %47 : vector<16x16xi32>
      %cst_31 = arith.constant 0.000000e+00 : f32
      %49 = vector.broadcast %cst_31 : f32 to vector<16x16xf32>
      %50 = arith.select %48, %5, %49 : vector<16x16xi1>, vector<16x16xf32>
      %cst_32 = arith.constant dense<0.000000e+00> : vector<16xf32>
      %51 = vector.multi_reduction <add>, %50, %cst_32 [1] : vector<16x16xf32> to vector<16xf32>
      %52 = vector.shape_cast %51 : vector<16xf32> to vector<16x1xf32>
      %c0_33 = arith.constant 0 : index
      %c0_34 = arith.constant 0 : index
      %53 = vector.load %arg8[%c0_33, %c0_34] : memref<16x1xf32, #tpu.memory_space<vmem>>, vector<16x1xf32>
      %54 = arith.subf %52, %16 : vector<16x1xf32>
      %55 = math.exp %54 : vector<16x1xf32>
      %56 = arith.subf %53, %55 : vector<16x1xf32>
      %c0_35 = arith.constant 0 : index
      %c0_36 = arith.constant 0 : index
      %57 = vector.load %arg8[%c0_35, %c0_36] : memref<16x1xf32, #tpu.memory_space<vmem>>, vector<16x1xf32>
      tpu.vector_store %arg8[%c0_35, %c0_36], %56 {strides = array<i32>} : memref<16x1xf32, #tpu.memory_space<vmem>>, vector<16x1xf32>,
      %c0_37 = arith.constant 0 : index
      %c0_38 = arith.constant 0 : index
      %58 = vector.load %arg9[%c0_37, %c0_38] : memref<16x1xf32, #tpu.memory_space<vmem>>, vector<16x1xf32>
      %59 = arith.subf %58, %52 : vector<16x1xf32>
      %c0_39 = arith.constant 0 : index
      %c0_40 = arith.constant 0 : index
      %60 = vector.load %arg9[%c0_39, %c0_40] : memref<16x1xf32, #tpu.memory_space<vmem>>, vector<16x1xf32>
      tpu.vector_store %arg9[%c0_39, %c0_40], %59 {strides = array<i32>} : memref<16x1xf32, #tpu.memory_space<vmem>>, vector<16x1xf32>,
      %c0_41 = arith.constant 0 : index
      %c0_42 = arith.constant 0 : index
      %61 = vector.load %arg10[%c0_41, %c0_42] : memref<16x1xf32, #tpu.memory_space<vmem>>, vector<16x1xf32>
      %cst_43 = arith.constant 1.000000e+00 : f32
      %62 = vector.broadcast %cst_43 : f32 to vector<16x1xf32>
      %63 = arith.subf %61, %62 : vector<16x1xf32>
      %c0_44 = arith.constant 0 : index
      %c0_45 = arith.constant 0 : index
      %64 = vector.load %arg10[%c0_44, %c0_45] : memref<16x1xf32, #tpu.memory_space<vmem>>, vector<16x1xf32>
      tpu.vector_store %arg10[%c0_44, %c0_45], %63 {strides = array<i32>} : memref<16x1xf32, #tpu.memory_space<vmem>>, vector<16x1xf32>,
    } else {
    }
    %c0_i32_29 = arith.constant 0 : i32
    %43 = arith.cmpi eq, %arg1, %c0_i32_29 : i32
    %44 = arith.extui %43 : i1 to i32
    %c0_i32_30 = arith.constant 0 : i32
    %45 = arith.cmpi ne, %44, %c0_i32_30 : i32
    scf.if %45 {
      %c0_31 = arith.constant 0 : index
      %c0_32 = arith.constant 0 : index
      %46 = vector.load %arg10[%c0_31, %c0_32] : memref<16x1xf32, #tpu.memory_space<vmem>>, vector<16x1xf32>
      %c0_33 = arith.constant 0 : index
      %c0_34 = arith.constant 0 : index
      %47 = vector.load %arg7[%c0_33, %c0_34] : memref<16x1xf32, #tpu.memory_space<vmem>>, vector<16x1xf32>
      %c0_35 = arith.constant 0 : index
      %c0_36 = arith.constant 0 : index
      %48 = vector.load %arg8[%c0_35, %c0_36] : memref<16x1xf32, #tpu.memory_space<vmem>>, vector<16x1xf32>
      %49 = math.log %48 : vector<16x1xf32>
      %50 = arith.addf %47, %49 : vector<16x1xf32>
      %c0_37 = arith.constant 0 : index
      %c0_38 = arith.constant 0 : index
      %51 = vector.load %arg9[%c0_37, %c0_38] : memref<16x1xf32, #tpu.memory_space<vmem>>, vector<16x1xf32>
      %52 = tpu.reciprocal %46 {approx = true} : vector<16x1xf32> -> vector<16x1xf32>
      %53 = arith.mulf %51, %52 : vector<16x1xf32>
      %54 = arith.subf %53, %50 : vector<16x1xf32>
      %cst_39 = arith.constant 5.000000e-01 : f32
      %55 = vector.broadcast %cst_39 : f32 to vector<16x1xf32>
      %56 = arith.cmpf ogt, %46, %55 : vector<16x1xf32>
      %cst_40 = arith.constant 0.000000e+00 : f32
      %57 = vector.broadcast %cst_40 : f32 to vector<16x1xf32>
      %58 = arith.select %56, %54, %57 : vector<16x1xi1>, vector<16x1xf32>
      %c0_41 = arith.constant 0 : index
      %c0_42 = arith.constant 0 : index
      %59 = vector.load %arg6[%c0_41, %c0_42] : memref<16x1xf32, #tpu.memory_space<vmem>>, vector<16x1xf32>
      tpu.vector_store %arg6[%c0_41, %c0_42], %58 {strides = array<i32>} : memref<16x1xf32, #tpu.memory_space<vmem>>, vector<16x1xf32>,
    } else {
    }
    return
  }
  func.func @transform_0(%arg0: i32, %arg1: i32) -> (i32, i32) {
    %c0_i32 = arith.constant 0 : i32
    %c0_i32_0 = arith.constant 0 : i32
    return %arg0, %c0_i32 : i32, i32
  }
  func.func @transform_1(%arg0: i32, %arg1: i32) -> (i32, i32) {
    %c0_i32 = arith.constant 0 : i32
    %c0_i32_0 = arith.constant 0 : i32
    return %arg1, %c0_i32 : i32, i32
  }
  func.func @transform_2(%arg0: i32, %arg1: i32) -> (i32, i32) {
    %c0_i32 = arith.constant 0 : i32
    %c0_i32_0 = arith.constant 0 : i32
    return %arg0, %c0_i32 : i32, i32
  }
  func.func @transform_3(%arg0: i32, %arg1: i32) -> (i32, i32) {
    %c0_i32 = arith.constant 0 : i32
    %c0_i32_0 = arith.constant 0 : i32
    return %c0_i32, %arg1 : i32, i32
  }
  func.func @transform_4(%arg0: i32, %arg1: i32) -> (i32, i32) {
    %c0_i32 = arith.constant 0 : i32
    %c0_i32_0 = arith.constant 0 : i32
    return %arg0, %c0_i32 : i32, i32
  }
}

</mosaic_0001>

<bundles_post_ra>
// kernel: tpu_custom_call.1
= control target key start
LH: loop header
LB: loop body
LE: loop exit
PB: predicated region body
PF: predicated region fallthrough
CT: control target
= control target key end

     0   :  { %v302_v0 = vmov 0.0   ;;  %vm303_vm0 = vmmov 0   ;;  %v304_v3 = vmov 0   ;;  %vm22_vm1 = vcmask 7168   ;;  %s424_s1 = inlined_call_operand.vmem [shape: bf16[16,128], index: 1, kind: input, shape index: {}]   ;;  %s425_s0 = inlined_call_operand.vmem [shape: bf16[16,128], index: 0, kind: input, shape index: {}]   ;;  %s426_s2 = inlined_call_operand.vmem [shape: s32[16,1], index: 2, kind: input, shape index: {}]   ;;  %s427_s3 = inlined_call_operand.vmem [shape: s32[1,16], index: 3, kind: input, shape index: {}]   ;;  %s428_s4 = inlined_call_operand.vmem [shape: f32[16,1], index: 4, kind: output, shape index: {}]  }
   0x1   :  { %268 = vmatprep.subr.bf16.mxu0 %v302_v0  ;;  %v280_v1 = vld [vmem:[%s424_s1] sm:$0xff]   ;;  %270 = vmatprep.mubr.msk.bf16.mxu0 %vm303_vm0, %v302_v0  ;;  %v305_v4 = vmov -inf   ;;  %25 = vst.msk [vmem:[#allocation3] sm:$0xff] %vm22_vm1, %v302_v0  ;;  %26 = vst.msk [vmem:[#allocation3 + $0x8] sm:$0xff] %vm22_vm1, %v302_v0  ;;  %vm109_vm2 = vcmask 130048   ;;  %v89_v18 = vld [vmem:[%s426_s2 + $0x8] sm:$0xff]  ;;  %v187_v23 = vlaneseq }
   0x2   :  { %269 = vmatpush3.bf16.xpose.msra.mxu0 %v280_v1  ;;  %v281_v2 = vld [vmem:[%s425_s0] sm:$0xff]   ;;  %279 = vset.pattern.permute.xlu0 %v304_v3  ;;  %23 = vst.msk [vmem:[#allocation2] sm:$0xff] %vm22_vm1, %v305_v4  ;;  %24 = vst.msk [vmem:[#allocation2 + $0x8] sm:$0xff] %vm22_vm1, %v305_v4 }
   0x3   :  { %278 = vset.pattern.permute.xlu1 %v304_v3  ;;  %27 = vst.msk [vmem:[#allocation4] sm:$0xff] %vm22_vm1, %v302_v0  ;;  %28 = vst.msk [vmem:[#allocation4 + $0x8] sm:$0xff] %vm22_vm1, %v302_v0  ;;  %v88_v11 = vld [vmem:[%s426_s2] sm:$0xff]  ;;  %v188_v24 = vshrl.u32 %v187_v23, 7  ;;  %v191_v25 = vand.u32 127, %v187_v23 }
   0x4   :  { %29 = vst.msk [vmem:[#allocation5] sm:$0xff] %vm22_vm1, %v302_v0  ;;  %30 = vst.msk [vmem:[#allocation5 + $0x8] sm:$0xff] %vm22_vm1, %v302_v0  ;;  %v261_v19 = vld [vmem:[%s427_s3] ss:$0 sm:$0xff] }
   0x5   :  { %vm192_vm4 = vcmp.eq.s32.totalorder %v188_v24, %v191_v25  ;;  %v189_v26 = vadd.s32 8, %v188_v24 }
   0x7   :  { %vm193_vm5 = vcmp.eq.s32.totalorder %v189_v26, %v191_v25 }
   0x8   :  { %v140_v63 = vld [vmem:[#allocation3] sm:$0xff]  ;;  %v141_v4 = vld [vmem:[#allocation3 + $0x8] sm:$0xff] }
   0x9   :  { %271 = vmatmul.mubr.bf16.vlgmr.msra.gmra.mrb[0].mxu0 %v281_v2  ;;  %v358_v12 = vld [vmem:[#allocation2] sm:$0xff]  ;;  %v363_v15 = vld [vmem:[#allocation2 + $0x8] sm:$0xff] }
   0xb   :  { %v169_v50 = vld [vmem:[#allocation5] sm:$0xff] }
  0xdc   :  { %v81_v5 = vpop.f32.mrb[0].mxu0 }
  0xdd   :  { %v272_v6 = vpop.f32.mrb[1].mxu0  ;;  %v110_v7 = vsel %vm109_vm2, %v81_v5, -inf  ;;  %v194_v27 = vsel %vm192_vm4, %v81_v5, 0.0 }
  0xde   :  { %111 = vmax.xlane.f32.xlu0 %v110_v7  ;;  %v84_v8 = vpop.f32.mrb[2].mxu0  ;;  %v196_v28 = vsel %vm109_vm2, %v194_v27, 0.0 }
  0xdf   :  { %v273_v9 = vpop.f32.mrb[3].mxu0  ;;  %v113_v10 = vsel %vm109_vm2, %v84_v8, -inf  ;;  %v195_v29 = vsel %vm193_vm5, %v84_v8, 0.0 }
  0xe0   :  { %v199_v30 = vsel %vm109_vm2, %v195_v29, 0.0  ;;  %v170_v9 = vld [vmem:[#allocation5 + $0x8] sm:$0xff] }
  0xe2   :  { %114 = vmax.xlane.f32.xlu0 %v113_v10 }
  0xf8   :  { %92 = vperm.xlu0 %279, %v88_v11  }
 0x16b   :  { %v112_v13 = vpop.xlane.xlu0 %111 }
 0x16c   :  { %v361_v14 = vmax.f32 %v358_v12, %v112_v13 }
 0x16e   :  { %181 = vst.msk [vmem:[#allocation2] sm:$0xff] %vm22_vm1, %v361_v14  ;;  %126 = vperm.xlu1 %278, %v361_v14   ;;  %v118_v55 = vsub.f32 %v358_v12, %v361_v14 }
 0x16f   :  { %v115_v16 = vpop.xlane.xlu0 %114 }
 0x170   :  { %v369_v17 = vmax.f32 %v363_v15, %v115_v16  ;;  %v120_v56 = vmul.f32 1.442695, %v118_v55 }
 0x172   :  { %182 = vst.msk [vmem:[#allocation2 + $0x8] sm:$0xff] %vm22_vm1, %v369_v17  ;;  %131 = vperm.xlu1 %278, %v369_v17   ;;  %v119_v57 = vsub.f32 %v363_v15, %v369_v17 }
 0x174   :  { %v122_v58 = vmul.f32 1.442695, %v119_v57 }
 0x176   :  { %95 = vperm.xlu1 %278, %v89_v18  }
 0x177   :  { %v93_v20 = vpop.permute.xlu0 %92 }
 0x178   :  { %vm101_vm3 = vcmp.eq.s32.totalorder %v93_v20, %v261_v19  ;;  %v156_v20 = vld [vmem:[#allocation4 + $0x8] sm:$0xff] }
 0x179   :  { %v262_v21 = vsel %vm101_vm3, 1.0, %v302_v0 }
 0x17a   :  { %v157_v22 = vmul.f32 %v262_v21, %v81_v5  ;;  %v171_v31 = vsel %vm109_vm2, %v262_v21, 0.0 }
 0x17c   :  { %v159_v45 = vsel %vm109_vm2, %v157_v22, 0.0 }
 0x19a   :  { %197 = vadd.xlane.f32.xlu1 %v196_v28 }
 0x19e   :  { %200 = vadd.xlane.f32.xlu1 %v199_v30 }
 0x1a2   :  { %172 = vadd.xlane.f32.xlu1 %v171_v31 }
 0x1ed   :  { %v127_v32 = vpop.permute.xlu1 %126 }
 0x1ee   :  { %v134_v33 = vsub.f32 %v81_v5, %v127_v32 }
 0x1f0   :  { %v136_v34 = vmul.f32 1.442695, %v134_v33 }
 0x1f1   :  { %v132_v35 = vpop.permute.xlu1 %131 }
 0x1f2   :  { %282 = vpow2.f32 %v136_v34  ;;  %v135_v36 = vsub.f32 %v84_v8, %v132_v35 }
 0x1f4   :  { %v138_v37 = vmul.f32 1.442695, %v135_v36 }
 0x1f5   :  { %v96_v39 = vpop.permute.xlu1 %95 }
 0x1f6   :  { %284 = vpow2.f32 %v138_v37  ;;  %vm102_vm6 = vcmp.eq.s32.totalorder %v96_v39, %v261_v19 }
 0x1f7   :  { %v263_v43 = vsel %vm102_vm6, 1.0, %v302_v0  ;;  %286 = vpow2.f32 %v120_v56 }
 0x1f8   :  { %v174_v44 = vsel %vm109_vm2, %v263_v43, 0.0  ;;  %v158_v46 = vmul.f32 %v263_v43, %v84_v8  ;;  %288 = vpow2.f32 %v122_v58 }
 0x1fa   :  { %v162_v47 = vsel %vm109_vm2, %v158_v46, 0.0  ;;  %v232_v46 = vld [vmem:[#allocation2 + $0x8] sm:$0xff] }
 0x1fc   :  { %v283_v38 = vpop.eup %282 }
 0x1fd   :  { %v144_v40 = vsel %vm109_vm2, %v283_v38, 0.0  ;;  %v231_v38 = vld [vmem:[#allocation2] sm:$0xff] }
 0x1fe   :  { %145 = vadd.xlane.f32.xlu0 %v144_v40 }
 0x200   :  { %v285_v41 = vpop.eup %284 }
 0x201   :  { %v147_v42 = vsel %vm109_vm2, %v285_v41, 0.0  ;;  %v287_v60 = vpop.eup %286 }
 0x202   :  { %148 = vadd.xlane.f32.xlu1 %v147_v42  ;;  %v142_v0 = vmul.f32 %v287_v60, %v140_v63  ;;  %v289_v1 = vpop.eup %288 }
 0x203   :  { %v143_v6 = vmul.f32 %v289_v1, %v141_v4 }
 0x206   :  { %175 = vadd.xlane.f32.xlu1 %v174_v44 }
 0x20a   :  { %160 = vadd.xlane.f32.xlu1 %v159_v45 }
 0x20e   :  { %163 = vadd.xlane.f32.xlu1 %v162_v47 }
 0x227   :  { %v390_v48 = vpop.xlane.xlu1 %197 }
 0x228   :  { %v204_v59 = vsub.f32 %v390_v48, %v361_v14  ;;  %v155_v14 = vld [vmem:[#allocation4] sm:$0xff] }
 0x22a   :  { %v206_v61 = vmul.f32 1.442695, %v204_v59 }
 0x22b   :  { %v392_v49 = vpop.xlane.xlu1 %200 }
 0x22c   :  { %v205_v62 = vsub.f32 %v392_v49, %v369_v17  ;;  %290 = vpow2.f32 %v206_v61 }
 0x22e   :  { %v208_v2 = vmul.f32 1.442695, %v205_v62 }
 0x22f   :  { %v173_v51 = vpop.xlane.xlu1 %172 }
 0x230   :  { %v177_v52 = vadd.f32 %v173_v51, %v169_v50  ;;  %292 = vpow2.f32 %v208_v2 }
 0x232   :  { %179 = vst.msk [vmem:[#allocation5] sm:$0xff] %vm22_vm1, %v177_v52 }
 0x236   :  { %v291_v12 = vpop.eup %290 }
 0x239   :  { %v220_v53 = vld [vmem:[#allocation5] sm:$0xff] }
 0x23a   :  { %v264_v54 = vadd.f32 -1.0, %v220_v53  ;;  %v293_v18 = vpop.eup %292 }
 0x23c   :  { %224 = vst.msk [vmem:[#allocation5] sm:$0xff] %vm22_vm1, %v264_v54 }
 0x243   :  { %v229_v23 = vld [vmem:[#allocation5] sm:$0xff] }
 0x244   :  { %294 = vrcp.f32 %v229_v23  ;;  %vm249_vm7 = vcmp.gt.f32.partialorder %v229_v23, 0.5 }
 0x24e   :  { %v295_v34 = vpop.eup %294 }
 0x28b   :  { %v146_v3 = vpop.xlane.xlu0 %145 }
 0x28c   :  { %v150_v5 = vadd.f32 %v146_v3, %v142_v0 }
 0x28e   :  { %153 = vst.msk [vmem:[#allocation3] sm:$0xff] %vm22_vm1, %v150_v5 }
 0x28f   :  { %v149_v7 = vpop.xlane.xlu1 %148 }
 0x290   :  { %v151_v8 = vadd.f32 %v149_v7, %v143_v6 }
 0x292   :  { %154 = vst.msk [vmem:[#allocation3 + $0x8] sm:$0xff] %vm22_vm1, %v151_v8 }
 0x293   :  { %v176_v10 = vpop.xlane.xlu1 %175 }
 0x294   :  { %v178_v11 = vadd.f32 %v176_v10, %v170_v9 }
 0x295   :  { %v202_v13 = vld [vmem:[#allocation3] sm:$0xff] }
 0x296   :  { %v210_v15 = vsub.f32 %v202_v13, %v291_v12  ;;  %180 = vst.msk [vmem:[#allocation5 + $0x8] sm:$0xff] %vm22_vm1, %v178_v11 }
 0x297   :  { %v161_v16 = vpop.xlane.xlu1 %160 }
 0x298   :  { %212 = vst.msk [vmem:[#allocation3] sm:$0xff] %vm22_vm1, %v210_v15  ;;  %v165_v17 = vadd.f32 %v161_v16, %v155_v14 }
 0x299   :  { %v203_v19 = vld [vmem:[#allocation3 + $0x8] sm:$0xff] }
 0x29a   :  { %v211_v21 = vsub.f32 %v203_v19, %v293_v18  ;;  %167 = vst.msk [vmem:[#allocation4] sm:$0xff] %vm22_vm1, %v165_v17 }
 0x29b   :  { %v164_v22 = vpop.xlane.xlu1 %163 }
 0x29c   :  { %213 = vst.msk [vmem:[#allocation3 + $0x8] sm:$0xff] %vm22_vm1, %v211_v21  ;;  %v166_v24 = vadd.f32 %v164_v22, %v156_v20 }
 0x29d   :  { %v221_v25 = vld [vmem:[#allocation5 + $0x8] sm:$0xff] }
 0x29e   :  { %v265_v26 = vadd.f32 -1.0, %v221_v25  ;;  %168 = vst.msk [vmem:[#allocation4 + $0x8] sm:$0xff] %vm22_vm1, %v166_v24 }
 0x29f   :  { %v233_v27 = vld [vmem:[#allocation3] sm:$0xff] }
 0x2a0   :  { %296 = vlog2.f32 %v233_v27  ;;  %225 = vst.msk [vmem:[#allocation5 + $0x8] sm:$0xff] %vm22_vm1, %v265_v26 }
 0x2a1   :  { %v214_v28 = vld [vmem:[#allocation4] sm:$0xff] }
 0x2a2   :  { %v216_v29 = vsub.f32 %v214_v28, %v390_v48 }
 0x2a3   :  { %v234_v30 = vld [vmem:[#allocation3 + $0x8] sm:$0xff] }
 0x2a4   :  { %298 = vlog2.f32 %v234_v30  ;;  %218 = vst.msk [vmem:[#allocation4] sm:$0xff] %vm22_vm1, %v216_v29 }
 0x2a5   :  { %v215_v31 = vld [vmem:[#allocation4 + $0x8] sm:$0xff] }
 0x2a6   :  { %v217_v32 = vsub.f32 %v215_v31, %v392_v49 }
 0x2a7   :  { %v230_v33 = vld [vmem:[#allocation5 + $0x8] sm:$0xff] }
 0x2a8   :  { %300 = vrcp.f32 %v230_v33  ;;  %219 = vst.msk [vmem:[#allocation4 + $0x8] sm:$0xff] %vm22_vm1, %v217_v32  ;;  %vm250_vm8 = vcmp.gt.f32.partialorder %v230_v33, 0.5 }
 0x2aa   :  { %v297_v35 = vpop.eup %296 }
 0x2ab   :  { %v236_v36 = vmul.f32 0.6931472, %v297_v35  ;;  %v241_v37 = vld [vmem:[#allocation4] sm:$0xff] }
 0x2ac   :  { %v245_v39 = vmul.f32 %v295_v34, %v241_v37 }
 0x2ad   :  { %v239_v40 = vadd.f32 %v236_v36, %v231_v38 }
 0x2ae   :  { %v299_v41 = vpop.eup %298 }
 0x2af   :  { %v238_v42 = vmul.f32 0.6931472, %v299_v41  ;;  %v247_v43 = vsub.f32 %v245_v39, %v239_v40  ;;  %v242_v47 = vld [vmem:[#allocation4 + $0x8] sm:$0xff] }
 0x2b1   :  { %v251_v44 = vsel %vm249_vm7, %v247_v43, 0.0  ;;  %v240_v48 = vadd.f32 %v238_v42, %v232_v46 }
 0x2b2   :  { %v301_v45 = vpop.eup %300  ;;  %253 = vst.msk [vmem:[%s428_s4] sm:$0xff] %vm22_vm1, %v251_v44 }
 0x2b3   :  { %v246_v49 = vmul.f32 %v301_v45, %v242_v47 }
 0x2b5   :  { %v248_v50 = vsub.f32 %v246_v49, %v240_v48 }
 0x2b7   :  { %v252_v51 = vsel %vm250_vm8, %v248_v50, 0.0 }
 0x2b8   :  { %254 = vst.msk [vmem:[%s428_s4 + $0x8] sm:$0xff] %vm22_vm1, %v252_v51 }

</bundles_post_ra>
